<compile_context>
chip_gen: v5e
topology: v5e:2x2
jax: 0.10.0
libtpu: 0.0.40
codegen_flags: <defaults>
</compile_context>

<pallas_src>
import math

import jax
import jax.numpy as jnp
from jax.experimental import pallas as pl
from jax.experimental.pallas import tpu as pltpu


def _copy_kernel(x_ref, o_ref):
    # Pure lane-dense copy of one (tile_b, tile_n) flat block.
    o_ref[...] = x_ref[...]


def _pick_tile(dim, unit, cap):
    """Block size along one dim.

    If the whole dim fits under `cap`, use the full dim (block == full array
    dim is always legal, divisible by `unit` or not).  Otherwise use `cap`,
    which is a multiple of `unit`; Pallas masks the partial trailing block.
    """
    return dim if dim <= cap else cap


def unflatten(x, w, *, alias_input=True):
    """Pallas equivalent of UnFlatten(w).forward(x).

    x : (B, ...) array; trailing dims flattened (free) so the kernel always
        copies a lane-dense (B, N) buffer.  Output is (B, nc, w, w) NCHW,
        identical to torch .view semantics (row-major).
    """
    B = x.shape[0]
    n = math.prod(x.shape[1:])
    nc = n // (w * w)
    assert nc * w * w == n, "element count not divisible by w**2"

    x_flat = x.reshape(B, n)  # free metadata reshape

    # Tile caps: multiples of (8, 128); 256 x 2048 f32 = 2 MiB per block, so
    # double-buffered in + out fits every generation's scoped-VMEM default.
    tile_b = _pick_tile(B, 8, 256)
    tile_n = _pick_tile(n, 128, 2048)
    grid = (pl.cdiv(B, tile_b), pl.cdiv(n, tile_n))

    out_flat = pl.pallas_call(
        _copy_kernel,
        out_shape=jax.ShapeDtypeStruct((B, n), x.dtype),
        grid=grid,
        in_specs=[pl.BlockSpec((tile_b, tile_n), lambda i, j: (i, j))],
        out_specs=pl.BlockSpec((tile_b, tile_n), lambda i, j: (i, j)),
        # Output data == input data, so aliasing is always safe; avoids a
        # second HBM allocation when the input buffer is donatable.
        input_output_aliases=({0: 0} if alias_input else {}),
        compiler_params=pltpu.CompilerParams(
            dimension_semantics=("parallel", "parallel")),
    )(x_flat)

    return out_flat.reshape(B, nc, w, w)  # free metadata reshape


if __name__ == "__main__":
    key = jax.random.PRNGKey(0)
    k1, k2 = jax.random.split(key)

    # Case 1: small shapes matching the module: batch=2, channels=4, spatial=16.
    B, nc, w = 2, 4, 16
    N = nc * w * w  # 1024
    x = jax.random.normal(k1, (B, N), dtype=jnp.float32)
    ref = x.reshape(B, nc, w, w)            # torch .view reference
    out = jax.block_until_ready(unflatten(x, w))
    assert out.shape == (B, nc, w, w)
    assert out.dtype == x.dtype
    assert jnp.array_equal(out, ref)

    # Case 2: exercises the tiled grid (grid = (1, 2)) and parallel semantics.
    B2, nc2, w2 = 16, 16, 16
    N2 = nc2 * w2 * w2  # 4096 -> two 2048-lane blocks
    x2 = jax.random.normal(k2, (B2, N2), dtype=jnp.float32)
    ref2 = x2.reshape(B2, nc2, w2, w2)
    out2 = jax.block_until_ready(unflatten(x2, w2))
    assert jnp.array_equal(out2, ref2)

    print("KERNEL_OK")
</pallas_src>

<mosaic_0001>
module attributes {stable_mosaic.version = 11 : i64} {
  func.func @_copy_kernel(%arg0: i32, %arg1: i32, %arg2: memref<2x1024xf32, #tpu.memory_space<vmem>>, %arg3: memref<2x1024xf32, #tpu.memory_space<vmem>>) attributes {dimension_semantics = [#tpu.dimension_semantics<parallel>, #tpu.dimension_semantics<parallel>], iteration_bounds = array<i64: 1, 1>, scalar_prefetch = 0 : i64, scratch_operands = 0 : i64, tpu.core_type = #tpu.core_type<tc>, window_params = [{transform_indices = @transform_0, window_bounds = array<i64: 2, 1024>}, {transform_indices = @transform_1, window_bounds = array<i64: 2, 1024>}]} {
    %c0 = arith.constant 0 : index
    %c0_0 = arith.constant 0 : index
    %0 = vector.load %arg2[%c0, %c0_0] : memref<2x1024xf32, #tpu.memory_space<vmem>>, vector<2x1024xf32>
    %c0_1 = arith.constant 0 : index
    %c0_2 = arith.constant 0 : index
    %1 = vector.load %arg3[%c0_1, %c0_2] : memref<2x1024xf32, #tpu.memory_space<vmem>>, vector<2x1024xf32>
    tpu.vector_store %arg3[%c0_1, %c0_2], %0 {strides = array<i32>} : memref<2x1024xf32, #tpu.memory_space<vmem>>, vector<2x1024xf32>,
    return
  }
  func.func @transform_0(%arg0: i32, %arg1: i32) -> (i32, i32) {
    %c0_i32 = arith.constant 0 : i32
    return %arg0, %arg1 : i32, i32
  }
  func.func @transform_1(%arg0: i32, %arg1: i32) -> (i32, i32) {
    %c0_i32 = arith.constant 0 : i32
    return %arg0, %arg1 : i32, i32
  }
}

</mosaic_0001>

<bundles_post_ra>
// kernel: tpu_custom_call.1
= control target key start
LH: loop header
LB: loop body
LE: loop exit
PB: predicated region body
PF: predicated region fallthrough
CT: control target
= control target key end

     0   :  { %6 = vsyncpa [#allocation3], 0  ;;  %s116_s0 = inlined_call_operand.hbm [shape: f32[2,1024], index: 0, kind: input, shape index: {}, may-alias: {0,1}]   ;;  %s117_s1 = inlined_call_operand.hbm [shape: f32[2,1024], index: 1, kind: output, shape index: {}, may-alias: {0,1}]  }
   0x1   :  { %7 = vsyncpa [#allocation4], 0  ;;  %s13_s8 = sshll.u32 %s116_s0, 4  ;;  %s98_s9 = smov [#allocation2]   ;;  %s14_s8 = int_to_ptr.hbm [resolvable:$true] %s13_s8 }
   0x2   :  { %s15_s10 = sshll.u32 %s98_s9, 4  ;;  %s16_s10 = int_to_ptr.vmem [resolvable:$true] %s15_s10 }
   0x3   :  { %18 = dma.hbm_to_vmem [thread:$0]  %s14_s8, 256, %s16_s10, [#allocation3]  }
   0x4   :  { %94 = dma.done.wait [#allocation3], 256  }
   0x5   :  { %95 = vsyncadd [#allocation3], 4294967040  ;;  %s99_s11 = smov [#allocation5]   ;;  %s34_s15 = sshll.u32 %s117_s1, 4  ;;  %v23_v0 = vld [vmem:[#allocation2] sm:$0xff]  ;;  %v24_v1 = vld [vmem:[#allocation2 + $0x8] sm:$0xff]  ;;  %s35_s15 = int_to_ptr.hbm [resolvable:$true] %s34_s15 }
   0x6   :  { %s32_s12 = sshll.u32 %s99_s11, 4  ;;  %25 = vst [vmem:[#allocation5] sm:$0xff] %v23_v0  ;;  %s33_s12 = int_to_ptr.vmem [resolvable:$true] %s32_s12 }
   0x7   :  { %26 = vst [vmem:[#allocation5 + $0x8] sm:$0xff] %v24_v1 }
   0x8   :  { %37 = dma.vmem_to_hbm [thread:$0]  %s33_s12, 256, %s35_s15, [#allocation4]  }
   0x9   :  { %96 = dma.done.wait [#allocation4], 256  }
   0xa   :  { %97 = vsyncadd [#allocation4], 4294967040 }
   0xb   :  { %42 = vsyncpa [#allocation3], 1 }
   0xc   :  { %43 = vsyncpa [#allocation4], 1 }

</bundles_post_ra>
